<compile_context>
chip_gen: v6e
topology: v6e:2x2x1
jax: 0.10.0
libtpu: 0.0.40
codegen_flags: <defaults>
</compile_context>

<pallas_src>
import numpy as np
import jax
import jax.numpy as jnp
from jax.experimental import pallas as pl
from jax.experimental.pallas import tpu as pltpu


def _round_up(x, m):
    return ((x + m - 1) // m) * m


def _bgconv_kernel(x_ref, adj_ref, w_ref, b_ref, o_ref):
    # x_ref:   (TB, Np, Fin)   current batch tile
    # adj_ref: (Np, Np)        grid-invariant, single-buffered
    # w_ref:   (Fin, Fo)       grid-invariant, single-buffered (Fo = 128-multiple)
    # b_ref:   (1, Fo)         grid-invariant, single-buffered
    # o_ref:   (TB, Np, Fo)    lane-dense output tile
    tb, n_p, f_in = x_ref.shape
    f_out = w_ref.shape[1]
    in_dtype = x_ref.dtype

    adj_b = jnp.broadcast_to(adj_ref[...][None], (tb, n_p, n_p)).astype(in_dtype)

    if f_out <= f_in:
        # support = X @ W first, then adj contraction (cheaper when Fout <= Fin).
        support = jnp.dot(x_ref[...].reshape(tb * n_p, f_in), w_ref[...],
                          preferred_element_type=jnp.float32)            # (TB*Np, Fo)
        support = support.reshape(tb, n_p, f_out).astype(in_dtype)
        out = jnp.einsum("bij,bjf->bif", adj_b, support,
                         preferred_element_type=jnp.float32)             # (TB, Np, Fo)
    else:
        # adj @ X first, then @ W (cheaper when Fin < Fout; associativity).
        ax = jnp.einsum("bij,bjk->bik", adj_b, x_ref[...],
                        preferred_element_type=jnp.float32)              # (TB, Np, Fin)
        ax = ax.astype(in_dtype)
        out = jnp.dot(ax.reshape(tb * n_p, f_in), w_ref[...],
                      preferred_element_type=jnp.float32
                      ).reshape(tb, n_p, f_out)                          # (TB, Np, Fo)

    o_ref[...] = (out + b_ref[...].astype(jnp.float32)[None]).astype(o_ref.dtype)


def batch_graph_convolution(x, adj, weight, bias, *, target_rows=256):
    """x: (B, N, F_in), adj: (N, N), weight: (F_in, F_out), bias: (1, F_out)."""
    B, N, Fin = x.shape
    Fout = weight.shape[1]
    dtype = x.dtype
    itemsize = jnp.dtype(dtype).itemsize

    # Padded geometry: N to a sublane multiple (free reshapes), Fout to a lane
    # multiple (unmasked, lane-dense output stores).
    Np = _round_up(N, 8)
    Fo = _round_up(Fout, 128)

    # Fuse TB batch elements per grid step so the MXU M dim approaches
    # `target_rows` (128-multiple friendly on v5e/v6e/v7x), bounded by VMEM.
    per_batch_bytes = 2 * itemsize * Np * (Fin + Fo)   # double-buffered x + out
    tb_rows = max(1, target_rows // Np)
    tb_vmem = max(1, (8 << 20) // max(per_batch_bytes, 1))
    TB = int(max(1, min(B, tb_rows, tb_vmem)))
    Bp = _round_up(B, TB)

    # Zero padding is exact for this op: padded nodes/features contribute 0 and
    # padded rows/columns are sliced off below.
    xp = jnp.pad(x, ((0, Bp - B), (0, Np - N), (0, 0)))
    adjp = jnp.pad(adj.astype(dtype), ((0, Np - N), (0, Np - N)))
    wp = jnp.pad(weight.astype(dtype), ((0, 0), (0, Fo - Fout)))
    bp = jnp.pad(bias.astype(dtype), ((0, 0), (0, Fo - Fout)))

    block_bytes = itemsize * (2 * TB * Np * (Fin + Fo) + Np * Np + Fin * Fo + Fo)
    vmem_limit = int(min(max(block_bytes + (16 << 20), 32 << 20), 64 << 20))

    # TODO(synk): for very large graphs (N^2 * itemsize approaching the VMEM
    # budget, esp. v7x's 64 MiB) add grid axes tiling adj over rows / the
    # contraction dim with an f32 VMEM accumulator + pl.when init/finalize.
    out_p = pl.pallas_call(
        _bgconv_kernel,
        out_shape=jax.ShapeDtypeStruct((Bp, Np, Fo), dtype),
        grid=(Bp // TB,),
        in_specs=[
            pl.BlockSpec((TB, Np, Fin), lambda b: (b, 0, 0)),       # batch tile of x
            # Grid-invariant operands: constant index_map + single buffer.
            pl.BlockSpec((Np, Np), lambda b: (0, 0),
                         pipeline_mode=pl.Buffered(1)),
            pl.BlockSpec((Fin, Fo), lambda b: (0, 0),
                         pipeline_mode=pl.Buffered(1)),
            pl.BlockSpec((1, Fo), lambda b: (0, 0),
                         pipeline_mode=pl.Buffered(1)),
        ],
        out_specs=pl.BlockSpec((TB, Np, Fo), lambda b: (b, 0, 0)),
        compiler_params=pltpu.CompilerParams(
            dimension_semantics=("parallel",),
            vmem_limit_bytes=vmem_limit,
        ),
    )(xp, adjp, wp, bp)

    return out_p[:B, :N, :Fout]


def _kronecker(A, B):
    # einsum('ab,cd->acbd').reshape — same as the PyTorch helper.
    return jnp.einsum("ab,cd->acbd", A, B).reshape(
        A.shape[0] * B.shape[0], A.shape[1] * B.shape[1]
    )


def _reference(x, adj, weight, bias):
    # Exact transcription of the PyTorch forward (GCN layer: adj_ @ (X @ W) + b).
    B, N, Fin = x.shape
    adj_ = _kronecker(jnp.eye(B, dtype=x.dtype), adj)          # (B*N, B*N)
    x_flat = x.reshape(-1, Fin)                                # (B*N, F_in)
    out = adj_ @ (x_flat @ weight) + bias                      # (B*N, F_out)
    return out.reshape(B, -1, weight.shape[1])


if __name__ == "__main__":
    # Graph from the module's globals: g0 has 3 nodes, adj = ones(3,3) - eye(3).
    N = 3
    adj_np = np.ones((N, N), dtype=np.float32) - np.eye(N, dtype=np.float32)

    B = 2
    Fin = 32
    Fout = 16

    key = jax.random.PRNGKey(0)
    kx, kw, kb = jax.random.split(key, 3)

    x = jax.random.normal(kx, (B, N, Fin), dtype=jnp.float32)
    # Deterministic GCN-style init: uniform in [-1/sqrt(Fout), 1/sqrt(Fout)].
    stdv = 1.0 / np.sqrt(Fout)
    weight = jax.random.uniform(kw, (Fin, Fout), dtype=jnp.float32,
                                minval=-stdv, maxval=stdv)
    bias = jax.random.uniform(kb, (1, Fout), dtype=jnp.float32,
                              minval=-stdv, maxval=stdv)
    adj = jnp.asarray(adj_np)

    out = batch_graph_convolution(x, adj, weight, bias)
    out = jax.block_until_ready(out)

    ref = _reference(x, adj, weight, bias)
    np.testing.assert_allclose(np.asarray(out), np.asarray(ref),
                               rtol=1e-5, atol=1e-5)

    print("KERNEL_OK")
</pallas_src>

<mosaic_0001>
module attributes {stable_mosaic.version = 11 : i64} {
  func.func @_bgconv_kernel(%arg0: i32, %arg1: memref<2x8x32xf32, #tpu.memory_space<vmem>>, %arg2: memref<8x8xf32, #tpu.memory_space<vmem>>, %arg3: memref<32x128xf32, #tpu.memory_space<vmem>>, %arg4: memref<1x128xf32, #tpu.memory_space<vmem>>, %arg5: memref<2x8x128xf32, #tpu.memory_space<vmem>>) attributes {dimension_semantics = [#tpu.dimension_semantics<parallel>], iteration_bounds = array<i64: 1>, scalar_prefetch = 0 : i64, scratch_operands = 0 : i64, tpu.core_type = #tpu.core_type<tc>, window_params = [{transform_indices = @transform_0, window_bounds = array<i64: 2, 8, 32>}, {pipeline_mode = #tpu.pipeline_mode<synchronous>, transform_indices = @transform_1, window_bounds = array<i64: 8, 8>}, {pipeline_mode = #tpu.pipeline_mode<synchronous>, transform_indices = @transform_2, window_bounds = array<i64: 32, 128>}, {pipeline_mode = #tpu.pipeline_mode<synchronous>, transform_indices = @transform_3, window_bounds = array<i64: 1, 128>}, {transform_indices = @transform_4, window_bounds = array<i64: 2, 8, 128>}]} {
    %c0 = arith.constant 0 : index
    %c0_0 = arith.constant 0 : index
    %0 = vector.load %arg2[%c0, %c0_0] : memref<8x8xf32, #tpu.memory_space<vmem>>, vector<8x8xf32>
    %1 = vector.shape_cast %0 : vector<8x8xf32> to vector<1x8x8xf32>
    %2 = vector.shape_cast %1 : vector<1x8x8xf32> to vector<1x8x8xf32>
    %3 = vector.broadcast %2 : vector<1x8x8xf32> to vector<2x8x8xf32>
    %c0_1 = arith.constant 0 : index
    %c0_2 = arith.constant 0 : index
    %c0_3 = arith.constant 0 : index
    %4 = vector.load %arg1[%c0_1, %c0_2, %c0_3] : memref<2x8x32xf32, #tpu.memory_space<vmem>>, vector<2x8x32xf32>
    "tpu.trace_start"() <{level = 10 : i32, message = "bij,bjk->bik"}> : () -> ()
    %cst = arith.constant dense<0.000000e+00> : vector<2x8x32xf32>
    %5 = tpu.matmul %3, %4, %cst {dimension_numbers = #tpu.dot_dimension_numbers<[2], [1], [1], [2], [0, 0, 0, 1, 1, 2], [0], [0]>} : vector<2x8x8xf32>, vector<2x8x32xf32>, vector<2x8x32xf32> -> vector<2x8x32xf32>
    "tpu.trace_stop"() : () -> ()
    %6 = vector.shape_cast %5 : vector<2x8x32xf32> to vector<16x32xf32>
    %c0_4 = arith.constant 0 : index
    %c0_5 = arith.constant 0 : index
    %7 = vector.load %arg3[%c0_4, %c0_5] : memref<32x128xf32, #tpu.memory_space<vmem>>, vector<32x128xf32>
    %cst_6 = arith.constant dense<0.000000e+00> : vector<16x128xf32>
    %8 = tpu.matmul %6, %7, %cst_6 {dimension_numbers = #tpu.dot_dimension_numbers<[1], [0], [0], [1], [0, 0, 1, 1], [], []>} : vector<16x32xf32>, vector<32x128xf32>, vector<16x128xf32> -> vector<16x128xf32>
    %9 = vector.shape_cast %8 : vector<16x128xf32> to vector<2x8x128xf32>
    %c0_7 = arith.constant 0 : index
    %c0_8 = arith.constant 0 : index
    %10 = vector.load %arg4[%c0_7, %c0_8] : memref<1x128xf32, #tpu.memory_space<vmem>>, vector<1x128xf32>
    %11 = vector.shape_cast %10 : vector<1x128xf32> to vector<1x1x128xf32>
    %12 = vector.broadcast %11 : vector<1x1x128xf32> to vector<2x8x128xf32>
    %13 = arith.addf %9, %12 : vector<2x8x128xf32>
    %c0_9 = arith.constant 0 : index
    %c0_10 = arith.constant 0 : index
    %c0_11 = arith.constant 0 : index
    %14 = vector.load %arg5[%c0_9, %c0_10, %c0_11] : memref<2x8x128xf32, #tpu.memory_space<vmem>>, vector<2x8x128xf32>
    tpu.vector_store %arg5[%c0_9, %c0_10, %c0_11], %13 {strides = array<i32>} : memref<2x8x128xf32, #tpu.memory_space<vmem>>, vector<2x8x128xf32>,
    return
  }
  func.func @transform_0(%arg0: i32) -> (i32, i32, i32) {
    %c0_i32 = arith.constant 0 : i32
    %c0_i32_0 = arith.constant 0 : i32
    %c0_i32_1 = arith.constant 0 : i32
    return %arg0, %c0_i32, %c0_i32_0 : i32, i32, i32
  }
  func.func @transform_1(%arg0: i32) -> (i32, i32) {
    %c0_i32 = arith.constant 0 : i32
    %c0_i32_0 = arith.constant 0 : i32
    %c0_i32_1 = arith.constant 0 : i32
    return %c0_i32, %c0_i32_0 : i32, i32
  }
  func.func @transform_2(%arg0: i32) -> (i32, i32) {
    %c0_i32 = arith.constant 0 : i32
    %c0_i32_0 = arith.constant 0 : i32
    %c0_i32_1 = arith.constant 0 : i32
    return %c0_i32, %c0_i32_0 : i32, i32
  }
  func.func @transform_3(%arg0: i32) -> (i32, i32) {
    %c0_i32 = arith.constant 0 : i32
    %c0_i32_0 = arith.constant 0 : i32
    %c0_i32_1 = arith.constant 0 : i32
    return %c0_i32, %c0_i32_0 : i32, i32
  }
  func.func @transform_4(%arg0: i32) -> (i32, i32, i32) {
    %c0_i32 = arith.constant 0 : i32
    %c0_i32_0 = arith.constant 0 : i32
    %c0_i32_1 = arith.constant 0 : i32
    return %arg0, %c0_i32, %c0_i32_0 : i32, i32, i32
  }
}

</mosaic_0001>

<bundles_post_ra>
// kernel: tpu_custom_call.1
= control target key start
LH: loop header
LB: loop body
LE: loop exit
PB: predicated region body
PF: predicated region fallthrough
CT: control target
= control target key end

     0   :  { %9 = vsyncpa [#allocation3], 0  ;;  %s506_s0 = inlined_call_operand.hbm [shape: f32[2,8,32], index: 0, kind: input, shape index: {}]   ;;  %s507_s1 = inlined_call_operand.hbm [shape: f32[8,8], index: 1, kind: input, shape index: {}]   ;;  %s508_s2 = inlined_call_operand.hbm [shape: f32[32,128], index: 2, kind: input, shape index: {}]   ;;  %s509_s3 = inlined_call_operand.vmem [shape: f32[1,128], index: 3, kind: input, shape index: {}]   ;;  %s510_s4 = inlined_call_operand.hbm [shape: f32[2,8,128], index: 4, kind: output, shape index: {}]  }
   0x1   :  { %10 = vsyncpa [#allocation6], 0 }
   0x2   :  { %11 = vsyncpa [#allocation4], 0  ;;  %s449_s15 = smov [#allocation5]   ;;  %s450_s17 = smov [#allocation2]  }
   0x3   :  { %s30_s16 = sshll.u32 %s449_s15, 4  ;;  %s17_s18 = sshll.u32 %s450_s17, 4  ;;  %s31_s16 = int_to_ptr.vmem [resolvable:$true] %s30_s16  ;;  %s18_s18 = int_to_ptr.vmem [resolvable:$true] %s17_s18 }
   0x4   :  { %s371_s19 = scalar_lea.vmem %s31_s16, 128  ;;  %p376_p1 = scmp.lt.s32.totalorder %s31_s16, %s31_s16 }
   0x5   :  { %p372_p0 = scmp.ne.s32.totalorder %s31_s16, %s371_s19  ;;  %p377_p2 = scmp.lt.s32.totalorder %s371_s19, %s371_s19 }
   0x7   :  { %p378_p3 = por %p377_p2, %p376_p1 }
   0x9   :  { %p379_p4 = pnand %p378_p3, %p372_p0 }
   0xb   :  { %382 = shalt.err (!%p379_p4)
}
   0xc   :  { %33 = dma.hbm_to_vmem [thread:$0]  %s507_s1, 128, %s31_s16, [#allocation6]  }
   0xd   :  { %s391_s22 = scalar_lea.vmem %s18_s18, 256  ;;  %p396_p6 = scmp.lt.s32.totalorder %s18_s18, %s18_s18 }
   0xe   :  { %p392_p5 = scmp.ne.s32.totalorder %s18_s18, %s391_s22  ;;  %p397_p7 = scmp.lt.s32.totalorder %s391_s22, %s391_s22 }
  0x10   :  { %p398_p8 = por %p397_p7, %p396_p6 }
  0x12   :  { %p399_p9 = pnand %p398_p8, %p392_p5 }
  0x14   :  { %402 = shalt.err (!%p399_p9)
}
  0x15   :  { %s451_s23 = smov 128   ;;  %s452_s24 = smov 8  }
  0x16   :  { %23 = dma.hbm_to_vmem [thread:$0]  %s506_s0, 256, %s18_s18, [#allocation3], %s451_s23, %s451_s23, %s452_s24  }
  0x17   :  { %s453_s27 = smov [#allocation7]  }
  0x18   :  { %s39_s28 = sshll.u32 %s453_s27, 4  ;;  %s40_s28 = int_to_ptr.vmem [resolvable:$true] %s39_s28 }
  0x19   :  { %s411_s1 = scalar_lea.vmem %s40_s28, 512  ;;  %p416_p11 = scmp.lt.s32.totalorder %s40_s28, %s40_s28 }
  0x1a   :  { %p412_p10 = scmp.ne.s32.totalorder %s40_s28, %s411_s1  ;;  %p417_p12 = scmp.lt.s32.totalorder %s411_s1, %s411_s1 }
  0x1c   :  { %p418_p13 = por %p417_p12, %p416_p11 }
  0x1e   :  { %p419_p0 = pnand %p418_p13, %p412_p10 }
  0x20   :  { %422 = shalt.err (!%p419_p0)
}
  0x21   :  { %45 = dma.hbm_to_vmem [thread:$0]  %s508_s2, 512, %s40_s28, [#allocation6], %s451_s23, %s451_s23, %s452_s24  }
  0x22   :  { %443 = dma.done.wait [#allocation3], 256  }
  0x23   :  { %444 = vsyncadd [#allocation3], 4294967040 }
  0x24   :  { %445 = dma.done.wait [#allocation6], 640  }
  0x25   :  { %446 = vsyncadd [#allocation6], 4294966656  ;;  %v454_v0 = vmov 0.0   ;;  %vm455_vm0 = vmmov 0   ;;  %vm60_vm1 = vcmask 64512   ;;  %v58_v1 = vld [vmem:[#allocation2] sm:$0xff] }
  0x26   :  { %334 = vmatprep.subr.mxu1 %v454_v0  ;;  %336 = vmatprep.mubr.msk.f32.mxu1 %vm455_vm0, %v454_v0  ;;  %v57_v2 = vld [vmem:[#allocation5] sm:$0xff]  ;;  %v59_v3 = vld [vmem:[#allocation2 + $0x8] sm:$0xff]  ;;  %v205_v6 = vld [vmem:[#allocation7 + $0x8] sm:$0xff]  ;;  %vm208_vm2 = vcmask 261120   ;;  %s456_s5 = smov [#allocation8]  }
  0x27   :  { %335 = vmatpush3.msra.mxu1 %v58_v1  ;;  %v207_v4 = vld [vmem:[#allocation7 + $0x18] sm:$0xff]  ;;  %v206_v5 = vld [vmem:[#allocation7 + $0x10] sm:$0xff]  ;;  %v204_v7 = vld [vmem:[#allocation7] sm:$0xff]  ;;  %s306_s6 = sshll.u32 %s456_s5, 4  ;;  %s307_s6 = int_to_ptr.vmem [resolvable:$true] %s306_s6 }
  0x28   :  { %337 = vmatmul.mubr.msk.f32.vlgmr.msra.gmra.mxu1 %vm60_vm1, %v57_v2  ;;  %339 = vmatprep.subr.mxu1 %v454_v0  ;;  %v323_v12 = vld [vmem:[%s509_s3] ss:$0 sm:$0xff]  ;;  %s423_s7 = scalar_lea.vmem %s307_s6, 256  ;;  %p428_p2 = scmp.lt.s32.totalorder %s307_s6, %s307_s6 }
  0x29   :  { %340 = vmatpush3.msra.mxu1 %v59_v3  ;;  %341 = vmatprep.mubr.msk.f32.mxu1 %vm455_vm0, %v454_v0  ;;  %p424_p1 = scmp.ne.s32.totalorder %s307_s6, %s423_s7  ;;  %p429_p3 = scmp.lt.s32.totalorder %s423_s7, %s423_s7 }
  0x2a   :  { %344 = vmatprep.subr.mxu0 %v207_v4 }
  0x2b   :  { %345 = vmatpush3.msra.mxu0 %v207_v4  ;;  %p430_p4 = por %p429_p3, %p428_p2 }
  0x2c   :  { %342 = vmatmul.mubr.msk.f32.vlgmr.msra.gmra.mxu1 %vm60_vm1, %v57_v2  ;;  %346 = vmatprep.subr.mxu0 %v206_v5 }
  0x2d   :  { %347 = vmatpush3.msra.mxu0 %v206_v5  ;;  %p431_p5 = pnand %p430_p4, %p424_p1 }
  0x2e   :  { %348 = vmatprep.subr.mxu0 %v205_v6 }
  0x2f   :  { %349 = vmatpush3.msra.mxu0 %v205_v6 }
  0x30   :  { %350 = vmatprep.subr.mxu0 %v204_v7 }
  0x31   :  { %351 = vmatpush3.msra.mxu0 %v204_v7 }
  0xe8   :  { %v130_v8 = vpop.f32.mrf.mxu1 }
  0xe9   :  { %352 = vmatprep.mubr.msk.f32.mxu0 %vm208_vm2, %v130_v8 }
  0xea   :  { %v338_v9 = vpop.f32.mrf.mxu1 }
  0xec   :  { %v200_v10 = vpop.f32.mrf.mxu1 }
  0xed   :  { %353 = vmatmul.mubr.msk.f32.vlgmr.msra.gmra.mxu0 %vm208_vm2, %v200_v10 }
  0xee   :  { %v343_v11 = vpop.f32.mrf.mxu1 }
 0x1ad   :  { %v354_v13 = vpop.f32.mrf.mxu0 }
 0x1ae   :  { %v298_v14 = vadd.f32 %v354_v13, %v323_v12 }
 0x1af   :  { %v281_v15 = vpop.f32.mrf.mxu0 }
 0x1b0   :  { %300 = vst [vmem:[#allocation8 + $0x8] sm:$0xff] %v298_v14  ;;  %v297_v16 = vadd.f32 %v323_v12, %v281_v15 }
 0x1b2   :  { %299 = vst [vmem:[#allocation8] sm:$0xff] %v297_v16 }
 0x1b3   :  { %434 = shalt.err (!%p431_p5)
}
 0x1b4   :  { %312 = dma.vmem_to_hbm [thread:$0]  %s307_s6, 256, %s510_s4, [#allocation4], %s451_s23, %s451_s23, %s452_s24  }
 0x1b5   :  { %447 = dma.done.wait [#allocation4], 256  }
 0x1b6   :  { %448 = vsyncadd [#allocation4], 4294967040 }
 0x1b7   :  { %316 = vsyncpa [#allocation3], 1 }
 0x1b8   :  { %317 = vsyncpa [#allocation6], 1 }
 0x1b9   :  { %318 = vsyncpa [#allocation4], 1 }

</bundles_post_ra>
